<compile_context>
chip_gen: v7x
topology: tpu7x:2x2x1
jax: 0.10.0
libtpu: 0.0.40
codegen_flags: <defaults>
</compile_context>

<pallas_src>
import functools

import jax
import jax.numpy as jnp
from jax.experimental import pallas as pl
from jax.experimental.pallas import tpu as pltpu


# ---------------------------------------------------------------------------
# Helpers
# ---------------------------------------------------------------------------
def _round_up(x, m):
    return (x + m - 1) // m * m


_VMEM_BUDGET_BYTES = 28 * 1024 * 1024   # all pipeline buffers + accumulator
_VMEM_LIMIT_BYTES = 40 * 1024 * 1024    # well under v7x's 64 MiB physical VMEM


# ---------------------------------------------------------------------------
# Kernel: out = sum(w * (pred - gt)^2)
#   pred/gt blocks: (tile_rows, feat), native dtype (cast to f32 in-vreg)
#   w block:        (tile_rows, 1) per-row weight OR (tile_rows, feat) per-element
#   acc scratch:    (tile_rows, feat) f32, persistent across the grid; single final
#                   cross-lane/sublane reduce into the (1,1) output.
# ---------------------------------------------------------------------------
def _weighted_sqdiff_sum_kernel(pred_ref, gt_ref, w_ref, out_ref, acc_ref, *,
                                rows, needs_mask):
    i = pl.program_id(0)

    @pl.when(i == 0)
    def _init():
        out_ref[...] = jnp.zeros_like(out_ref)
        acc_ref[...] = jnp.zeros_like(acc_ref)

    d = pred_ref[...].astype(jnp.float32) - gt_ref[...].astype(jnp.float32)
    term = d * d * w_ref[...]                 # w broadcasts along lanes if (tile, 1)

    if needs_mask:
        # Last (partial) tile: out-of-bounds block rows contain undefined data
        # (possibly NaN/Inf) -> mask the weighted term explicitly.
        tile = acc_ref.shape[0]
        ridx = jax.lax.broadcasted_iota(jnp.int32, term.shape, 0) + i * tile
        term = jnp.where(ridx < rows, term, 0.0)

    acc_ref[...] += term                      # VPU-only per-step work

    @pl.when(i == pl.num_programs(0) - 1)
    def _finalize():
        out_ref[...] += jnp.sum(acc_ref[...])  # single cross-lane/sublane reduce


def _weighted_sq_loss(pred2, gt2, w, tile_rows=None):
    """pred2, gt2: [rows, feat] (native dtype); w: [rows, 1] or [rows, feat] float32."""
    rows, feat = pred2.shape
    w_feat = w.shape[1]
    in_item = jnp.dtype(pred2.dtype).itemsize
    feat_pad = _round_up(feat, 128)
    wfeat_pad = _round_up(w_feat, 128)

    # VMEM per row: 2 inputs double-buffered + weight double-buffered + f32 accumulator.
    per_row = 2 * 2 * feat_pad * in_item + 2 * wfeat_pad * 4 + feat_pad * 4

    if tile_rows is None:
        tile_rows = max(8, (_VMEM_BUDGET_BYTES // per_row) // 8 * 8)
    else:
        tile_rows = max(8, (tile_rows // 8) * 8)
    if tile_rows >= rows:
        tile_rows = rows          # single block; block dims == array dims is allowed

    num_tiles = -(-rows // tile_rows)
    needs_mask = (rows % tile_rows) != 0

    kernel = functools.partial(_weighted_sqdiff_sum_kernel,
                               rows=rows, needs_mask=needs_mask)

    out = pl.pallas_call(
        kernel,
        out_shape=jax.ShapeDtypeStruct((1, 1), jnp.float32),
        grid=(num_tiles,),
        in_specs=[
            pl.BlockSpec((tile_rows, feat), lambda i: (i, 0)),
            pl.BlockSpec((tile_rows, feat), lambda i: (i, 0)),
            pl.BlockSpec((tile_rows, w_feat), lambda i: (i, 0)),
        ],
        out_specs=pl.BlockSpec((1, 1), lambda i: (0, 0)),
        scratch_shapes=[pltpu.VMEM((tile_rows, feat), jnp.float32)],
        compiler_params=pltpu.CompilerParams(
            dimension_semantics=("arbitrary",),
            vmem_limit_bytes=_VMEM_LIMIT_BYTES,
        ),
    )(pred2, gt2, w)
    return out[0, 0]


# ---------------------------------------------------------------------------
# Wrapper (mirrors ParameterLossPCKT.forward)
# ---------------------------------------------------------------------------
def parameter_loss_pckt(pred_param, gt_param, has_param,
                        valid_mask=None, weak_mask=None, LOOSE_WEIGHT=0.01):
    pred_param = jnp.asarray(pred_param)      # keep native dtype (bf16 stays bf16)
    gt_param = jnp.asarray(gt_param)

    if valid_mask is not None:
        B, S = pred_param.shape[:2]
        feat = 1
        for d in pred_param.shape[2:]:
            feat *= d
        pred2 = pred_param.reshape(B, S * feat)        # free row-major reshape
        gt2 = gt_param.reshape(B, S * feat)
        w = jnp.asarray(valid_mask, jnp.float32)
        if weak_mask is not None:
            w = w + jnp.float32(LOOSE_WEIGHT) * jnp.asarray(weak_mask, jnp.float32)
        # Expand the per-(b, s) weight across the d2*d3 features (tiny fused XLA op).
        w_full = jnp.broadcast_to(w.reshape(B, S, 1), (B, S, feat)).reshape(B, S * feat)
        return _weighted_sq_loss(pred2, gt2, w_full)

    # ----- has_param branch -----
    B = pred_param.shape[0]
    pred2 = pred_param.reshape(B, -1)                  # native [B, feat] — no transpose
    gt2 = gt_param.reshape(B, -1)
    w = jnp.asarray(has_param, jnp.float32).reshape(B, 1)
    return _weighted_sq_loss(pred2, gt2, w)


# ---------------------------------------------------------------------------
# Pure-JAX reference (mirrors the PyTorch module)
# ---------------------------------------------------------------------------
def _reference(pred, gt, has_param, valid_mask=None, weak_mask=None, LOOSE_WEIGHT=0.01):
    pred = pred.astype(jnp.float32)
    gt = gt.astype(jnp.float32)
    mse = (pred - gt) ** 2
    if valid_mask is not None:
        loss = (valid_mask * mse.sum((2, 3))).sum()
        if weak_mask is not None:
            loss = loss + LOOSE_WEIGHT * (weak_mask * mse.sum((2, 3))).sum()
        return loss
    p = pred.reshape(pred.shape[0], -1)
    g = gt.reshape(gt.shape[0], -1)
    h = has_param.astype(p.dtype).reshape(p.shape[0], 1)
    return (h * (p - g) ** 2).sum()


if __name__ == "__main__":
    key = jax.random.PRNGKey(0)
    k1, k2, k3, k4, k5, k6, k7, k8, k9 = jax.random.split(key, 9)

    B, S, d2, d3 = 2, 8, 3, 3                     # per-joint 3x3 rotation params
    pred = jax.random.normal(k1, (B, S, d2, d3), jnp.float32)
    gt = jax.random.normal(k2, (B, S, d2, d3), jnp.float32)
    valid_mask = (jax.random.uniform(k3, (B, S)) > 0.3).astype(jnp.float32)
    weak_mask = (jax.random.uniform(k4, (B, S)) > 0.5).astype(jnp.float32)
    has_param = (jax.random.uniform(k5, (B,)) > 0.5).astype(jnp.float32)

    # Branch 1: valid_mask + weak_mask
    out1 = jax.block_until_ready(
        parameter_loss_pckt(pred, gt, has_param, valid_mask, weak_mask, 0.01))
    ref1 = _reference(pred, gt, has_param, valid_mask, weak_mask, 0.01)

    # Branch 2: valid_mask only
    out2 = jax.block_until_ready(
        parameter_loss_pckt(pred, gt, has_param, valid_mask, None, 0.01))
    ref2 = _reference(pred, gt, has_param, valid_mask, None, 0.01)

    # Branch 3: has_param (no valid_mask) — per-row [B, 1] weight, rows not mult of 8
    out3 = jax.block_until_ready(
        parameter_loss_pckt(pred, gt, has_param, None, None, 0.01))
    ref3 = _reference(pred, gt, has_param, None, None, 0.01)

    # Branch 4: bf16 inputs stay bf16 on the wire; f32 accumulate in-kernel
    pred_bf = pred.astype(jnp.bfloat16)
    gt_bf = gt.astype(jnp.bfloat16)
    out4 = jax.block_until_ready(
        parameter_loss_pckt(pred_bf, gt_bf, has_param, valid_mask, weak_mask, 0.01))
    ref4 = _reference(pred_bf, gt_bf, has_param, valid_mask, weak_mask, 0.01)

    # Branch 5: multi-tile grid + masked partial last tile, per-row weight
    R, F = 50, 72
    p5 = jax.random.normal(k6, (R, F), jnp.float32)
    g5 = jax.random.normal(k7, (R, F), jnp.float32)
    w5 = (jax.random.uniform(k8, (R, 1)) > 0.4).astype(jnp.float32)
    out5 = jax.block_until_ready(_weighted_sq_loss(p5, g5, w5, tile_rows=16))
    ref5 = (w5 * (p5 - g5) ** 2).sum()

    # Branch 6: multi-tile grid + masked partial last tile, per-element weight
    w6 = jax.random.uniform(k9, (R, F), dtype=jnp.float32)
    out6 = jax.block_until_ready(_weighted_sq_loss(p5, g5, w6, tile_rows=16))
    ref6 = (w6 * (p5 - g5) ** 2).sum()

    assert jnp.allclose(out1, ref1, rtol=1e-5, atol=1e-5), (out1, ref1)
    assert jnp.allclose(out2, ref2, rtol=1e-5, atol=1e-5), (out2, ref2)
    assert jnp.allclose(out3, ref3, rtol=1e-5, atol=1e-5), (out3, ref3)
    assert jnp.allclose(out4, ref4, rtol=1e-4, atol=1e-4), (out4, ref4)
    assert jnp.allclose(out5, ref5, rtol=1e-5, atol=1e-5), (out5, ref5)
    assert jnp.allclose(out6, ref6, rtol=1e-5, atol=1e-5), (out6, ref6)

    print("KERNEL_OK")
</pallas_src>

<mosaic_0001>
module attributes {stable_mosaic.version = 11 : i64} {
  func.func @_weighted_sqdiff_sum_kernel(%arg0: i32, %arg1: memref<2x72xf32, #tpu.memory_space<vmem>>, %arg2: memref<2x72xf32, #tpu.memory_space<vmem>>, %arg3: memref<2x72xf32, #tpu.memory_space<vmem>>, %arg4: memref<1x1xf32, #tpu.memory_space<vmem>>, %arg5: memref<2x72xf32, #tpu.memory_space<vmem>>) attributes {dimension_semantics = [#tpu.dimension_semantics<arbitrary>], iteration_bounds = array<i64: 1>, scalar_prefetch = 0 : i64, scratch_operands = 1 : i64, tpu.core_type = #tpu.core_type<tc>, window_params = [{transform_indices = @transform_0, window_bounds = array<i64: 2, 72>}, {transform_indices = @transform_1, window_bounds = array<i64: 2, 72>}, {transform_indices = @transform_2, window_bounds = array<i64: 2, 72>}, {pipeline_mode = #tpu.pipeline_mode<synchronous>, transform_indices = @transform_3, window_bounds = array<i64: 1, 1>}]} {
    %c0_i32 = arith.constant 0 : i32
    %0 = arith.cmpi eq, %arg0, %c0_i32 : i32
    %1 = arith.extui %0 : i1 to i32
    %c0_i32_0 = arith.constant 0 : i32
    %2 = arith.cmpi ne, %1, %c0_i32_0 : i32
    scf.if %2 {
      %cst = arith.constant 0.000000e+00 : f32
      %15 = vector.broadcast %cst : f32 to vector<1x1xf32>
      %c0_12 = arith.constant 0 : index
      %c0_13 = arith.constant 0 : index
      %16 = vector.load %arg4[%c0_12, %c0_13] : memref<1x1xf32, #tpu.memory_space<vmem>>, vector<1x1xf32>
      tpu.vector_store %arg4[%c0_12, %c0_13], %15 {strides = array<i32>} : memref<1x1xf32, #tpu.memory_space<vmem>>, vector<1x1xf32>,
      %cst_14 = arith.constant 0.000000e+00 : f32
      %17 = vector.broadcast %cst_14 : f32 to vector<2x72xf32>
      %c0_15 = arith.constant 0 : index
      %c0_16 = arith.constant 0 : index
      %18 = vector.load %arg5[%c0_15, %c0_16] : memref<2x72xf32, #tpu.memory_space<vmem>>, vector<2x72xf32>
      tpu.vector_store %arg5[%c0_15, %c0_16], %17 {strides = array<i32>} : memref<2x72xf32, #tpu.memory_space<vmem>>, vector<2x72xf32>,
    } else {
    }
    %c0 = arith.constant 0 : index
    %c0_1 = arith.constant 0 : index
    %3 = vector.load %arg1[%c0, %c0_1] : memref<2x72xf32, #tpu.memory_space<vmem>>, vector<2x72xf32>
    %c0_2 = arith.constant 0 : index
    %c0_3 = arith.constant 0 : index
    %4 = vector.load %arg2[%c0_2, %c0_3] : memref<2x72xf32, #tpu.memory_space<vmem>>, vector<2x72xf32>
    %5 = arith.subf %3, %4 : vector<2x72xf32>
    %6 = arith.mulf %5, %5 : vector<2x72xf32>
    %c0_4 = arith.constant 0 : index
    %c0_5 = arith.constant 0 : index
    %7 = vector.load %arg3[%c0_4, %c0_5] : memref<2x72xf32, #tpu.memory_space<vmem>>, vector<2x72xf32>
    %8 = arith.mulf %6, %7 : vector<2x72xf32>
    %c0_6 = arith.constant 0 : index
    %c0_7 = arith.constant 0 : index
    %9 = vector.load %arg5[%c0_6, %c0_7] : memref<2x72xf32, #tpu.memory_space<vmem>>, vector<2x72xf32>
    %10 = arith.addf %9, %8 : vector<2x72xf32>
    %c0_8 = arith.constant 0 : index
    %c0_9 = arith.constant 0 : index
    %11 = vector.load %arg5[%c0_8, %c0_9] : memref<2x72xf32, #tpu.memory_space<vmem>>, vector<2x72xf32>
    tpu.vector_store %arg5[%c0_8, %c0_9], %10 {strides = array<i32>} : memref<2x72xf32, #tpu.memory_space<vmem>>, vector<2x72xf32>,
    %c0_i32_10 = arith.constant 0 : i32
    %12 = arith.cmpi eq, %arg0, %c0_i32_10 : i32
    %13 = arith.extui %12 : i1 to i32
    %c0_i32_11 = arith.constant 0 : i32
    %14 = arith.cmpi ne, %13, %c0_i32_11 : i32
    scf.if %14 {
      %c0_12 = arith.constant 0 : index
      %c0_13 = arith.constant 0 : index
      %15 = vector.load %arg4[%c0_12, %c0_13] : memref<1x1xf32, #tpu.memory_space<vmem>>, vector<1x1xf32>
      %c0_14 = arith.constant 0 : index
      %c0_15 = arith.constant 0 : index
      %16 = vector.load %arg5[%c0_14, %c0_15] : memref<2x72xf32, #tpu.memory_space<vmem>>, vector<2x72xf32>
      %17 = vector.shape_cast %16 : vector<2x72xf32> to vector<1x2x72xf32>
      %cst = arith.constant dense<0.000000e+00> : vector<1xf32>
      %18 = vector.multi_reduction <add>, %17, %cst [1, 2] : vector<1x2x72xf32> to vector<1xf32>
      %19 = vector.shape_cast %18 : vector<1xf32> to vector<1x1x1xf32>
      %20 = vector.extract %19[0, 0, 0] : f32 from vector<1x1x1xf32>
      %21 = vector.broadcast %20 : f32 to vector<1x1xf32>
      %22 = arith.addf %15, %21 : vector<1x1xf32>
      %c0_16 = arith.constant 0 : index
      %c0_17 = arith.constant 0 : index
      %23 = vector.load %arg4[%c0_16, %c0_17] : memref<1x1xf32, #tpu.memory_space<vmem>>, vector<1x1xf32>
      tpu.vector_store %arg4[%c0_16, %c0_17], %22 {strides = array<i32>} : memref<1x1xf32, #tpu.memory_space<vmem>>, vector<1x1xf32>,
    } else {
    }
    return
  }
  func.func @transform_0(%arg0: i32) -> (i32, i32) {
    %c0_i32 = arith.constant 0 : i32
    %c0_i32_0 = arith.constant 0 : i32
    return %arg0, %c0_i32 : i32, i32
  }
  func.func @transform_1(%arg0: i32) -> (i32, i32) {
    %c0_i32 = arith.constant 0 : i32
    %c0_i32_0 = arith.constant 0 : i32
    return %arg0, %c0_i32 : i32, i32
  }
  func.func @transform_2(%arg0: i32) -> (i32, i32) {
    %c0_i32 = arith.constant 0 : i32
    %c0_i32_0 = arith.constant 0 : i32
    return %arg0, %c0_i32 : i32, i32
  }
  func.func @transform_3(%arg0: i32) -> (i32, i32) {
    %c0_i32 = arith.constant 0 : i32
    %c0_i32_0 = arith.constant 0 : i32
    %c0_i32_1 = arith.constant 0 : i32
    return %c0_i32, %c0_i32_0 : i32, i32
  }
}

</mosaic_0001>

<bundles_post_ra>
// kernel: tpu_custom_call.1
= control target key start
LH: loop header
LB: loop body
LE: loop exit
PB: predicated region body
PF: predicated region fallthrough
CT: control target
= control target key end

     0   :  { %8 = vsyncpa [#allocation4], 0  ;;  %s187_s0 = inlined_call_operand.hbm [shape: f32[2,72], index: 0, kind: input, shape index: {}]   ;;  %s188_s1 = inlined_call_operand.vmem [shape: f32[2,72], index: 1, kind: input, shape index: {}]   ;;  %s189_s2 = inlined_call_operand.vmem [shape: f32[2,72], index: 2, kind: input, shape index: {}]   ;;  %s190_s3 = inlined_call_operand.hbm [shape: f32[1,1], index: 3, kind: output, shape index: {}]  }
   0x1   :  { %9 = vsyncpa [#allocation5], 0  ;;  %s132_s12 = smov [#allocation3]   ;;  %s84_s16 = scalar_lea.hbm %s187_s0, 32 }
   0x2   :  { %s16_s13 = sshll.u32 %s132_s12, 4  ;;  %p85_p0 = scmp.ne.s32.totalorder %s187_s0, %s84_s16  ;;  %s17_s13 = int_to_ptr.vmem [resolvable:$true] %s16_s13 }
   0x3   :  { %p88_p1 = scmp.lt.u32.totalorder %s84_s16, %s187_s0 }
   0x5   :  { %p90_p2 = pnand %p88_p1, %p85_p0 }
   0x7   :  { %93 = shalt.err (!%p90_p2)
}
   0x8   :  { %s94_s21 = scalar_lea.vmem %s17_s13, 32  ;;  %p99_p4 = scmp.lt.s32.totalorder %s17_s13, %s17_s13 }
   0x9   :  { %p95_p3 = scmp.ne.s32.totalorder %s17_s13, %s94_s21  ;;  %p100_p5 = scmp.lt.s32.totalorder %s94_s21, %s94_s21 }
   0xb   :  { %p101_p6 = por %p100_p5, %p99_p4 }
   0xd   :  { %p102_p7 = pnand %p101_p6, %p95_p3 }
   0xf   :  { %105 = shalt.err (!%p102_p7)
}
  0x10   :  { %19 = dma.hbm_to_vmem [thread:$0]  %s187_s0, 32, %s17_s13, [#allocation4]  }
  0x11   :  { %128 = dma.done.wait [#allocation4], 32  }
  0x12   :  { %129 = vsyncadd [#allocation4], 4294967264  ;;  %vm31_vm0 = vcmask 0   ;;  %vm33_vm1 = vcmask 582656   ;;  %v133_v0 = vmov 0.0   ;;  %s134_s0 = smov [#allocation6]  }
  0x13   :  { %32 = vst.msk [vmem:[#allocation6] sm:$0x1] %vm31_vm0, %v133_v0  ;;  %v35_v1 = vld [vmem:[#allocation3] sm:$0x3]  ;;  %v36_v2 = vld [vmem:[%s188_s1] sm:$0x3] }
  0x14   :  { %34 = vst.msk [vmem:[#allocation2] sm:$0x3] %vm33_vm1, %v133_v0  ;;  %v37_v3 = vsub.f32 %v35_v1, %v36_v2  ;;  %v39_v4 = vld [vmem:[%s189_s2] sm:$0x3]  ;;  %s70_s1 = sshll.u32 %s134_s0, 4  ;;  %s71_s1 = int_to_ptr.vmem [resolvable:$true] %s70_s1 }
  0x15   :  { %s106_s28 = scalar_lea.vmem %s71_s1, 16  ;;  %s110_s29 = scalar_lea.vmem %s71_s1, 32 }
  0x16   :  { %v38_v5 = vmul.f32 %v37_v3, %v37_v3  ;;  %p107_p8 = scmp.ne.s32.totalorder %s71_s1, %s106_s28  ;;  %p111_p9 = scmp.lt.s32.totalorder %s71_s1, %s71_s1 }
  0x17   :  { %p112_p10 = scmp.lt.s32.totalorder %s110_s29, %s106_s28 }
  0x18   :  { %v40_v7 = vmul.f32 %v39_v4, %v38_v5 }
  0x19   :  { %p113_p11 = por %p112_p10, %p111_p9 }
  0x1a   :  { %v48_v18 = vld [vmem:[#allocation6] sm:$0x1] }
  0x1b   :  { %v41_v6 = vld [vmem:[#allocation2] sm:$0x3]  ;;  %p114_p12 = pnand %p113_p11, %p107_p8 }
  0x1c   :  { %v42_v8 = vadd.f32 %v41_v6, %v40_v7 }
  0x1e   :  { %44 = vst.msk [vmem:[#allocation2] sm:$0x3] %vm33_vm1, %v42_v8 }
  0x25   :  { %v49_v9 = vld [vmem:[#allocation2] sm:$0x3] }
  0x26   :  { %v50_v10 = vsel %vm33_vm1, %v49_v9, 0.0 }
  0x27   :  { %51 = vadd.xlane.f32.xlu0 %v50_v10 }
  0xb4   :  { %v52_v11 = vpop.xlane.xlu0 %51 }
  0xb5   :  { %v53_v12 = vrot.slane %v52_v11, 4 }
  0xb7   :  { %v54_v13 = vadd.f32 %v53_v12, %v52_v11 }
  0xb9   :  { %v55_v14 = vrot.slane %v54_v13, 2 }
  0xbb   :  { %v56_v15 = vadd.f32 %v55_v14, %v54_v13 }
  0xbd   :  { %v57_v16 = vrot.slane %v56_v15, 1 }
  0xbf   :  { %v58_v17 = vadd.f32 %v57_v16, %v56_v15 }
  0xc1   :  { %79 = vpush %v58_v17 }
  0xf2   :  { %s80_s2 = spop %79 }
  0xf3   :  { %v60_v19 = vstv %s80_s2 }
  0xf4   :  { %v61_v20 = vadd.f32 %v60_v19, %v48_v18 }
  0xf6   :  { %63 = vst.msk [vmem:[#allocation6] sm:$0x1] %vm31_vm0, %v61_v20 }
  0xf7   :  { %117 = shalt.err (!%p114_p12)
}
  0xf8   :  { %s118_s5 = scalar_lea.hbm %s190_s3, 16 }
  0xf9   :  { %p119_p13 = scmp.ne.s32.totalorder %s190_s3, %s118_s5  ;;  %p122_p0 = scmp.lt.u32.totalorder %s118_s5, %s190_s3 }
  0xfb   :  { %p124_p1 = pnand %p122_p0, %p119_p13 }
  0xfd   :  { %127 = shalt.err (!%p124_p1)
}
  0xfe   :  { %73 = dma.vmem_to_hbm [thread:$0]  %s71_s1, 16, %s190_s3, [#allocation5]  }
  0xff   :  { %130 = dma.done.wait [#allocation5], 16  }
 0x100   :  { %131 = vsyncadd [#allocation5], 4294967280 }
 0x101   :  { %77 = vsyncpa [#allocation4], 1 }
 0x102   :  { %78 = vsyncpa [#allocation5], 1 }

</bundles_post_ra>
